<compile_context>
chip_gen: v5e
topology: v5e:2x2
jax: 0.10.0
libtpu: 0.0.40
codegen_flags: <defaults>
</compile_context>

<pallas_src>
import functools

import jax
import jax.numpy as jnp
from jax.experimental import pallas as pl
from jax.experimental.pallas import tpu as pltpu


def _ceil_to(x: int, m: int) -> int:
    return ((x + m - 1) // m) * m


def encoder_kernel(x_ref, w1_ref, b1_ref, w2_ref, b2_ref, o_ref):
    # fc1: x @ W1 + b1   (bf16 operands, f32 accumulate on the MXU)
    h = jnp.dot(x_ref[...], w1_ref[...], preferred_element_type=jnp.float32)
    h = h + b1_ref[...].astype(jnp.float32)        # (TB, Hp) + (1, Hp)
    # LeakyReLU(0.2) in f32: max(h, 0.2*h) == where(h>0, h, 0.2*h) for slope<1
    h = jnp.maximum(h, 0.2 * h)
    # fc2: h @ W2 + b2 (cast h back to the weight dtype for the MXU)
    out = jnp.dot(h.astype(w2_ref.dtype), w2_ref[...],
                  preferred_element_type=jnp.float32)
    out = out + b2_ref[...].astype(jnp.float32)    # (TB, Op) + (1, Op)
    # ReLU in f32
    out = jnp.maximum(out, 0.0)
    o_ref[...] = out.astype(o_ref.dtype)


def prepare_encoder_params(w1, b1, w2, b2, compute_dtype=jnp.bfloat16):
    """One-time: pad weights lane-dense (128) and cast matmul operands to
    compute_dtype. Call OUTSIDE the hot path and reuse the result."""
    R, H = w1.shape
    _, O = w2.shape
    Rp, Hp, Op = _ceil_to(R, 128), _ceil_to(H, 128), _ceil_to(O, 128)
    w1_p = jnp.zeros((Rp, Hp), compute_dtype).at[:R, :H].set(w1.astype(compute_dtype))
    w2_p = jnp.zeros((Hp, Op), compute_dtype).at[:H, :O].set(w2.astype(compute_dtype))
    # Biases stay f32 (tiny; keeps the epilogue exact).
    b1_p = jnp.zeros((1, Hp), jnp.float32).at[0, :H].set(b1.astype(jnp.float32))
    b2_p = jnp.zeros((1, Op), jnp.float32).at[0, :O].set(b2.astype(jnp.float32))
    return w1_p, b1_p, w2_p, b2_p


def _vmem_ceiling_bytes():
    # Generation-aware cap: leave ~25% headroom for compiler scratch/semaphores
    # (v7x: 64 MiB physical per TC -> ~48 MiB; v5e/v6e: 128 MiB -> ~96 MiB).
    try:
        cap = int(pltpu.get_tpu_info().vmem_capacity_bytes)
    except Exception:
        cap = 64 << 20
    return max(int(0.75 * cap), 8 << 20)


@functools.partial(jax.jit, static_argnames=("out_features", "batch_tile"))
def encoder_forward(att, noise, w1_p, b1_p, w2_p, b2_p, *, out_features,
                    batch_tile=512):
    """att: (B, attSize); noise: (B, nz); *_p: outputs of prepare_encoder_params.
    Returns (B, out_features) float32."""
    B, A = att.shape
    Z = noise.shape[1]
    Rp, Hp = w1_p.shape
    Op = w2_p.shape[1]
    cdtype = w1_p.dtype                    # bf16 compute dtype
    out_dtype = jnp.float32

    # Batch tile: multiple of 16 (bf16 sublane packing) or the requested tile.
    TB = batch_tile if B >= batch_tile else _ceil_to(B, 16)
    Bp = _ceil_to(B, TB)

    # Build the padded activation slab directly (no intermediate concat array).
    x_p = jnp.zeros((Bp, Rp), cdtype)
    x_p = x_p.at[:B, :A].set(att.astype(cdtype))
    x_p = x_p.at[:B, A:A + Z].set(noise.astype(cdtype))

    grid = (Bp // TB,)

    # VMEM budget: double-buffered x/out tiles, single-buffered weights/biases,
    # plus the f32 intermediates (h and the fc2 accumulator).
    w_item = jnp.dtype(cdtype).itemsize
    need = (2 * TB * Rp * w_item                 # x tiles (double-buffered)
            + 2 * TB * Op * 4                    # out tiles (double-buffered, f32)
            + (Rp * Hp + Hp * Op) * w_item       # weights (single-buffered)
            + (Hp + Op) * 4                      # biases (f32)
            + TB * Hp * 4 + TB * Op * 4)         # f32 intermediates
    vmem_limit = min(max(int(1.25 * need) + (2 << 20), 8 << 20),
                     _vmem_ceiling_bytes())

    resident = pl.Buffered(1)  # constant index_map -> no double-buffering
    out_p = pl.pallas_call(
        encoder_kernel,
        out_shape=jax.ShapeDtypeStruct((Bp, Op), out_dtype),
        grid=grid,
        in_specs=[
            pl.BlockSpec((TB, Rp), lambda i: (i, 0)),                           # x: tiled over batch
            pl.BlockSpec((Rp, Hp), lambda i: (0, 0), pipeline_mode=resident),   # W1
            pl.BlockSpec((1, Hp), lambda i: (0, 0), pipeline_mode=resident),    # b1
            pl.BlockSpec((Hp, Op), lambda i: (0, 0), pipeline_mode=resident),   # W2
            pl.BlockSpec((1, Op), lambda i: (0, 0), pipeline_mode=resident),    # b2
        ],
        out_specs=pl.BlockSpec((TB, Op), lambda i: (i, 0)),
        compiler_params=pltpu.CompilerParams(
            dimension_semantics=("parallel",),
            vmem_limit_bytes=int(vmem_limit),
        ),
    )(x_p, w1_p, b1_p, w2_p, b2_p)

    return out_p[:B, :out_features]
    # TODO(synk): for very large attSize+nz or ngh where the weight slabs no
    # longer fit the per-TC VMEM cap (v7x: ~48 MiB), add a trailing "arbitrary"
    # grid axis over Hp with a VMEM f32 accumulator (pl.when init on k==0,
    # store on last k) instead of shrinking the batch tile.
    # TODO(synk): on v7x verify the "parallel" batch axis actually shards across
    # both TensorCores; if not, switch to pltpu.CORE_PARALLEL on a leading axis.


def init_params(key, att_size, nz, ngh, res_size, dtype=jnp.float32):
    """Mimics weights_init: Linear weights ~ N(0, 0.02), biases = 0."""
    k1, k2 = jax.random.split(key)
    # PyTorch Linear weight is (out, in); transpose to (in, out) for x @ W.
    w1 = (0.02 * jax.random.normal(k1, (ngh, att_size + nz), dtype=dtype)).T
    w2 = (0.02 * jax.random.normal(k2, (res_size, ngh), dtype=dtype)).T
    b1 = jnp.zeros((ngh,), dtype=dtype)
    b2 = jnp.zeros((res_size,), dtype=dtype)
    return w1, b1, w2, b2


if __name__ == "__main__":
    # Small shapes consistent with the module: opt.attSize, opt.nz, opt.ngh, opt.resSize.
    batch, att_size, nz, ngh, res_size = 4, 32, 16, 64, 96

    key = jax.random.PRNGKey(0)
    ka, kn, kp = jax.random.split(key, 3)
    att = jax.random.normal(ka, (batch, att_size), dtype=jnp.float32)
    noise = jax.random.normal(kn, (batch, nz), dtype=jnp.float32)
    w1, b1, w2, b2 = init_params(kp, att_size, nz, ngh, res_size)

    # One-time weight preparation (padding + bf16 cast), outside the hot path.
    w1_p, b1_p, w2_p, b2_p = prepare_encoder_params(w1, b1, w2, b2)

    out = encoder_forward(att, noise, w1_p, b1_p, w2_p, b2_p,
                          out_features=res_size)
    jax.block_until_ready(out)

    # Reference in plain JAX (matches the PyTorch forward), with matmul operands
    # rounded to bf16 like the kernel's.
    cd = jnp.bfloat16
    x_ref = jnp.concatenate((att, noise), axis=1)
    xb = x_ref.astype(cd).astype(jnp.float32)
    w1b = w1.astype(cd).astype(jnp.float32)
    w2b = w2.astype(cd).astype(jnp.float32)
    h_ref = xb @ w1b + b1
    h_ref = jnp.maximum(h_ref, 0.2 * h_ref)                      # LeakyReLU(0.2)
    h_ref_b = h_ref.astype(cd).astype(jnp.float32)
    ref = jnp.maximum(h_ref_b @ w2b + b2, 0.0)                   # ReLU

    assert out.shape == (batch, res_size)
    assert out.dtype == jnp.float32
    assert jnp.allclose(out, ref, atol=1e-2, rtol=1e-2)

    print("KERNEL_OK")
</pallas_src>

<mosaic_0001>
module attributes {stable_mosaic.version = 11 : i64} {
  func.func @encoder_kernel(%arg0: i32, %arg1: memref<16x128xbf16, #tpu.memory_space<vmem>>, %arg2: memref<128x128xbf16, #tpu.memory_space<vmem>>, %arg3: memref<1x128xf32, #tpu.memory_space<vmem>>, %arg4: memref<128x128xbf16, #tpu.memory_space<vmem>>, %arg5: memref<1x128xf32, #tpu.memory_space<vmem>>, %arg6: memref<16x128xf32, #tpu.memory_space<vmem>>) attributes {dimension_semantics = [#tpu.dimension_semantics<parallel>], iteration_bounds = array<i64: 1>, scalar_prefetch = 0 : i64, scratch_operands = 0 : i64, tpu.core_type = #tpu.core_type<tc>, window_params = [{transform_indices = @transform_0, window_bounds = array<i64: 16, 128>}, {pipeline_mode = #tpu.pipeline_mode<synchronous>, transform_indices = @transform_1, window_bounds = array<i64: 128, 128>}, {pipeline_mode = #tpu.pipeline_mode<synchronous>, transform_indices = @transform_2, window_bounds = array<i64: 1, 128>}, {pipeline_mode = #tpu.pipeline_mode<synchronous>, transform_indices = @transform_3, window_bounds = array<i64: 128, 128>}, {pipeline_mode = #tpu.pipeline_mode<synchronous>, transform_indices = @transform_4, window_bounds = array<i64: 1, 128>}, {transform_indices = @transform_5, window_bounds = array<i64: 16, 128>}]} {
    %c0 = arith.constant 0 : index
    %c0_0 = arith.constant 0 : index
    %0 = vector.load %arg1[%c0, %c0_0] : memref<16x128xbf16, #tpu.memory_space<vmem>>, vector<16x128xbf16>
    %c0_1 = arith.constant 0 : index
    %c0_2 = arith.constant 0 : index
    %1 = vector.load %arg2[%c0_1, %c0_2] : memref<128x128xbf16, #tpu.memory_space<vmem>>, vector<128x128xbf16>
    %cst = arith.constant dense<0.000000e+00> : vector<16x128xf32>
    %2 = tpu.matmul %0, %1, %cst {dimension_numbers = #tpu.dot_dimension_numbers<[1], [0], [0], [1], [0, 0, 1, 1], [], []>} : vector<16x128xbf16>, vector<128x128xbf16>, vector<16x128xf32> -> vector<16x128xf32>
    %c0_3 = arith.constant 0 : index
    %c0_4 = arith.constant 0 : index
    %3 = vector.load %arg3[%c0_3, %c0_4] : memref<1x128xf32, #tpu.memory_space<vmem>>, vector<1x128xf32>
    %4 = vector.broadcast %3 : vector<1x128xf32> to vector<16x128xf32>
    %5 = arith.addf %2, %4 : vector<16x128xf32>
    %cst_5 = arith.constant 2.000000e-01 : f32
    %6 = vector.broadcast %cst_5 : f32 to vector<16x128xf32>
    %7 = arith.mulf %6, %5 : vector<16x128xf32>
    %8 = arith.maximumf %5, %7 : vector<16x128xf32>
    %9 = arith.truncf %8 : vector<16x128xf32> to vector<16x128xbf16>
    %c0_6 = arith.constant 0 : index
    %c0_7 = arith.constant 0 : index
    %10 = vector.load %arg4[%c0_6, %c0_7] : memref<128x128xbf16, #tpu.memory_space<vmem>>, vector<128x128xbf16>
    %cst_8 = arith.constant dense<0.000000e+00> : vector<16x128xf32>
    %11 = tpu.matmul %9, %10, %cst_8 {dimension_numbers = #tpu.dot_dimension_numbers<[1], [0], [0], [1], [0, 0, 1, 1], [], []>} : vector<16x128xbf16>, vector<128x128xbf16>, vector<16x128xf32> -> vector<16x128xf32>
    %c0_9 = arith.constant 0 : index
    %c0_10 = arith.constant 0 : index
    %12 = vector.load %arg5[%c0_9, %c0_10] : memref<1x128xf32, #tpu.memory_space<vmem>>, vector<1x128xf32>
    %13 = vector.broadcast %12 : vector<1x128xf32> to vector<16x128xf32>
    %14 = arith.addf %11, %13 : vector<16x128xf32>
    %cst_11 = arith.constant 0.000000e+00 : f32
    %15 = vector.broadcast %cst_11 : f32 to vector<16x128xf32>
    %16 = arith.maximumf %14, %15 : vector<16x128xf32>
    %c0_12 = arith.constant 0 : index
    %c0_13 = arith.constant 0 : index
    %17 = vector.load %arg6[%c0_12, %c0_13] : memref<16x128xf32, #tpu.memory_space<vmem>>, vector<16x128xf32>
    tpu.vector_store %arg6[%c0_12, %c0_13], %16 {strides = array<i32>} : memref<16x128xf32, #tpu.memory_space<vmem>>, vector<16x128xf32>,
    return
  }
  func.func @transform_0(%arg0: i32) -> (i32, i32) {
    %c0_i32 = arith.constant 0 : i32
    %c0_i32_0 = arith.constant 0 : i32
    return %arg0, %c0_i32 : i32, i32
  }
  func.func @transform_1(%arg0: i32) -> (i32, i32) {
    %c0_i32 = arith.constant 0 : i32
    %c0_i32_0 = arith.constant 0 : i32
    %c0_i32_1 = arith.constant 0 : i32
    return %c0_i32, %c0_i32_0 : i32, i32
  }
  func.func @transform_2(%arg0: i32) -> (i32, i32) {
    %c0_i32 = arith.constant 0 : i32
    %c0_i32_0 = arith.constant 0 : i32
    %c0_i32_1 = arith.constant 0 : i32
    return %c0_i32, %c0_i32_0 : i32, i32
  }
  func.func @transform_3(%arg0: i32) -> (i32, i32) {
    %c0_i32 = arith.constant 0 : i32
    %c0_i32_0 = arith.constant 0 : i32
    %c0_i32_1 = arith.constant 0 : i32
    return %c0_i32, %c0_i32_0 : i32, i32
  }
  func.func @transform_4(%arg0: i32) -> (i32, i32) {
    %c0_i32 = arith.constant 0 : i32
    %c0_i32_0 = arith.constant 0 : i32
    %c0_i32_1 = arith.constant 0 : i32
    return %c0_i32, %c0_i32_0 : i32, i32
  }
  func.func @transform_5(%arg0: i32) -> (i32, i32) {
    %c0_i32 = arith.constant 0 : i32
    %c0_i32_0 = arith.constant 0 : i32
    return %arg0, %c0_i32 : i32, i32
  }
}

</mosaic_0001>

<bundles_post_ra>
// kernel: encoder_forward.1
= control target key start
LH: loop header
LB: loop body
LE: loop exit
PB: predicated region body
PF: predicated region fallthrough
CT: control target
= control target key end

     0   :  { %10 = vsyncpa [#allocation3], 0  ;;  %s437_s0 = inlined_call_operand.vmem [shape: bf16[16,128], index: 0, kind: input, shape index: {}]   ;;  %s438_s1 = inlined_call_operand.hbm [shape: bf16[128,128], index: 1, kind: input, shape index: {}]   ;;  %s439_s2 = inlined_call_operand.vmem [shape: f32[1,128], index: 2, kind: input, shape index: {}]   ;;  %s440_s3 = inlined_call_operand.hbm [shape: bf16[128,128], index: 3, kind: input, shape index: {}]   ;;  %s441_s4 = inlined_call_operand.vmem [shape: f32[1,128], index: 4, kind: input, shape index: {}]   ;;  %s442_s5 = inlined_call_operand.vmem [shape: f32[16,128], index: 5, kind: output, shape index: {}]  }
   0x1   :  { %s18_s20 = sshll.u32 %s438_s1, 4  ;;  %s19_s20 = int_to_ptr.hbm [resolvable:$true] %s18_s20 }
   0x2   :  { %11 = vsyncpa [#allocation5], 0  ;;  %s382_s21 = smov [#allocation2]   ;;  %s33_s25 = sshll.u32 %s440_s3, 4  ;;  %s34_s25 = int_to_ptr.hbm [resolvable:$true] %s33_s25 }
   0x3   :  { %s20_s22 = sshll.u32 %s382_s21, 4  ;;  %s383_s26 = smov 64   ;;  %s21_s22 = int_to_ptr.vmem [resolvable:$true] %s20_s22 }
   0x4   :  { %s384_s27 = smov 4   ;;  %s385_s28 = smov [#allocation4]  }
   0x5   :  { %26 = dma.hbm_to_vmem [thread:$0]  %s19_s20, 1024, %s21_s22, [#allocation3], %s383_s26, %s383_s26, %s384_s27  }
   0x6   :  { %s35_s29 = sshll.u32 %s385_s28, 4  ;;  %s36_s29 = int_to_ptr.vmem [resolvable:$true] %s35_s29 }
   0x7   :  { %41 = dma.hbm_to_vmem [thread:$0]  %s34_s25, 1024, %s36_s29, [#allocation5], %s383_s26, %s383_s26, %s384_s27  }
   0x8   :  { %378 = dma.done.wait [#allocation3], 1024  }
   0x9   :  { %379 = vsyncadd [#allocation3], 4294966272 }
   0xa   :  { %380 = dma.done.wait [#allocation5], 1024  }
   0xb   :  { %381 = vsyncadd [#allocation5], 4294966272  ;;  %v315_v0 = vld [vmem:[#allocation2 + $0x38] sm:$0xff]  ;;  %v314_v1 = vld [vmem:[#allocation2 + $0x30] sm:$0xff] }
   0xc   :  { %128 = vmatpush.bf16.msra.mxu0 %v315_v0  ;;  %v323_v2 = vld [vmem:[#allocation4 + $0x38] sm:$0xff]  ;;  %v322_v3 = vld [vmem:[#allocation4 + $0x30] sm:$0xff]  ;;  %v313_v4 = vld [vmem:[#allocation2 + $0x28] sm:$0xff] }
   0xd   :  { %215 = vmatpush.bf16.msra.mxu1 %v323_v2  ;;  %v321_v5 = vld [vmem:[#allocation4 + $0x28] sm:$0xff]  ;;  %v312_v6 = vld [vmem:[#allocation2 + $0x20] sm:$0xff]  ;;  %v311_v8 = vld [vmem:[#allocation2 + $0x18] sm:$0xff] }
   0xe   :  { %v320_v7 = vld [vmem:[#allocation4 + $0x20] sm:$0xff]  ;;  %v310_v9 = vld [vmem:[#allocation2 + $0x10] sm:$0xff]  ;;  %v309_v10 = vld [vmem:[#allocation2 + $0x8] sm:$0xff] }
   0xf   :  { %v308_v11 = vld [vmem:[#allocation2] sm:$0xff]  ;;  %v319_v13 = vld [vmem:[#allocation4 + $0x18] sm:$0xff]  ;;  %v318_v14 = vld [vmem:[#allocation4 + $0x10] sm:$0xff] }
  0x10   :  { %129 = vmatpush.bf16.msra.mxu0 %v314_v1  ;;  %v307_v12 = vld [vmem:[%s437_s0] sm:$0xff]  ;;  %v317_v15 = vld [vmem:[#allocation4 + $0x8] sm:$0xff] }
  0x11   :  { %216 = vmatpush.bf16.msra.mxu1 %v322_v3  ;;  %v316_v16 = vld [vmem:[#allocation4] sm:$0xff] }
  0x12   :  { %v328_v18 = vld [vmem:[%s439_s2] ss:$0 sm:$0xff] }
  0x13   :  { %v329_v27 = vld [vmem:[%s441_s4] ss:$0 sm:$0xff] }
  0x14   :  { %130 = vmatpush.bf16.msra.mxu0 %v313_v4 }
  0x15   :  { %217 = vmatpush.bf16.msra.mxu1 %v321_v5 }
  0x18   :  { %131 = vmatpush.bf16.msra.mxu0 %v312_v6 }
  0x19   :  { %218 = vmatpush.bf16.msra.mxu1 %v320_v7 }
  0x1c   :  { %132 = vmatpush.bf16.msra.mxu0 %v311_v8 }
  0x1d   :  { %219 = vmatpush.bf16.msra.mxu1 %v319_v13 }
  0x20   :  { %133 = vmatpush.bf16.msra.mxu0 %v310_v9 }
  0x21   :  { %220 = vmatpush.bf16.msra.mxu1 %v318_v14 }
  0x24   :  { %134 = vmatpush.bf16.msra.mxu0 %v309_v10 }
  0x25   :  { %221 = vmatpush.bf16.msra.mxu1 %v317_v15 }
  0x28   :  { %135 = vmatpush.bf16.msra.mxu0 %v308_v11 }
  0x29   :  { %222 = vmatpush.bf16.msra.mxu1 %v316_v16 }
  0x2b   :  { %136 = vmatmul.bf16.vlgmr.msra.gmra.mxu0 %v307_v12 }
  0xa8   :  { %v137_v17 = vpop.f32.mrf.mxu0 }
  0xa9   :  { %v138_v19 = vadd.f32 %v328_v18, %v137_v17 }
  0xab   :  { %v142_v21 = vmul.f32 0.2, %v138_v19 }
  0xad   :  { %v144_v24 = vmax.f32 %v138_v19, %v142_v21 }
  0xb0   :  { %v139_v20 = vpop.f32.mrf.mxu0 }
  0xb1   :  { %v140_v22 = vadd.f32 %v328_v18, %v139_v20 }
  0xb3   :  { %v143_v23 = vmul.f32 0.2, %v140_v22 }
  0xb5   :  { %v145_v25 = vmax.f32 %v140_v22, %v143_v23 }
  0xb7   :  { %v146_v26 = vpack.c.bf16 %v145_v25, %v144_v24 }
  0xb9   :  { %223 = vmatmul.bf16.vlgmr.msra.gmra.mxu1 %v146_v26 }
 0x136   :  { %v224_v28 = vpop.f32.mrf.mxu1 }
 0x137   :  { %v225_v29 = vadd.f32 %v329_v27, %v224_v28 }
 0x139   :  { %v229_v30 = vmax.f32 %v225_v29, 0.0 }
 0x13b   :  { %231 = vst [vmem:[%s442_s5] sm:$0xff] %v229_v30 }
 0x13e   :  { %v226_v31 = vpop.f32.mrf.mxu1 }
 0x13f   :  { %v227_v32 = vadd.f32 %v329_v27, %v226_v31 }
 0x141   :  { %v230_v33 = vmax.f32 %v227_v32, 0.0 }
 0x143   :  { %232 = vst [vmem:[%s442_s5 + $0x8] sm:$0xff] %v230_v33 }
 0x144   :  { %237 = vsyncpa [#allocation3], 1 }
 0x145   :  { %238 = vsyncpa [#allocation5], 1 }

</bundles_post_ra>
